<compile_context>
chip_gen: v7x
topology: tpu7x:2x2x1
jax: 0.10.0
libtpu: 0.0.40
codegen_flags: <defaults>
</compile_context>

<pallas_src>
import jax
import jax.numpy as jnp
from jax.experimental import pallas as pl
from jax.experimental.pallas import tpu as pltpu

LN_EPS = 1e-5  # PyTorch nn.LayerNorm default


def _layernorm(x, gamma, beta):
    # Single-pass mean / variance (biased, like torch.nn.LayerNorm).
    n = x.shape[-1]
    inv_n = 1.0 / float(n)
    s = jnp.sum(x, axis=-1, keepdims=True)
    ss = jnp.sum(x * x, axis=-1, keepdims=True)
    mu = s * inv_n
    var = jnp.maximum(ss * inv_n - mu * mu, 0.0)
    return (x - mu) * jax.lax.rsqrt(var + LN_EPS) * gamma + beta


def critic_kernel(obs_ref,        # (TILE_B, D)  f32
                  pobs_ref,       # (2, D)       rows: fn_gamma, fn_beta
                  w1_ref,         # (D, H)
                  w2_ref,         # (H, H)
                  phid_ref,       # (8, H)       rows: b1,g1,e1,b2,g2,e2,wv,pad
                  bv_ref,         # (1,)         SMEM scalar (v_out bias)
                  val_ref):       # (TILE_B, 1)
    x = obs_ref[...]

    # feature normalization (LayerNorm over obs_dim)
    x = _layernorm(x, pobs_ref[0:1, :], pobs_ref[1:2, :])

    b1 = phid_ref[0:1, :]
    g1 = phid_ref[1:2, :]
    e1 = phid_ref[2:3, :]
    b2 = phid_ref[3:4, :]
    g2 = phid_ref[4:5, :]
    e2 = phid_ref[5:6, :]
    wv = phid_ref[6:7, :]

    # fc1: Linear -> ReLU -> LayerNorm
    h = jnp.dot(x, w1_ref[...], preferred_element_type=jnp.float32) + b1
    h = jnp.maximum(h, 0.0)
    h = _layernorm(h, g1, e1)

    # fc_h (layer_N = 1): Linear -> ReLU -> LayerNorm
    h = jnp.dot(h, w2_ref[...], preferred_element_type=jnp.float32) + b2
    h = jnp.maximum(h, 0.0)
    h = _layernorm(h, g2, e2)

    # v_out: Linear(H, 1) as VPU multiply + lane reduction (avoids N=1 MXU matmul)
    val_ref[...] = jnp.sum(h * wv, axis=-1, keepdims=True) + bv_ref[0]


def multi_agent_critic_forward(cent_obs, rnn_states, masks, params, *, tile_b=512):
    """Returns (values [B,1] f32, rnn_states unchanged) — matches the module."""
    cent_obs = cent_obs.astype(jnp.float32)
    rnn_states = rnn_states.astype(jnp.float32)
    masks = masks.astype(jnp.float32)  # unused by the non-recurrent MLP critic path

    B, D = cent_obs.shape
    H = params["w1"].shape[1]

    # Batch tile: multiple of 8 sublanes, capped at tile_b; pad B up so the grid is exact.
    tile = max(8, min(int(tile_b), ((B + 7) // 8) * 8))
    tile = ((tile + 7) // 8) * 8
    b_pad = ((B + tile - 1) // tile) * tile
    obs = cent_obs if b_pad == B else jnp.pad(cent_obs, ((0, b_pad - B), (0, 0)))
    grid = (b_pad // tile,)

    # Pack the tiny (1, .) parameter vectors into two slabs.
    p_obs = jnp.concatenate([params["fn_g"], params["fn_b"]], axis=0)          # (2, D)
    p_hid = jnp.concatenate(
        [params["b1"], params["g1"], params["e1"],
         params["b2"], params["g2"], params["e2"],
         params["wv"], jnp.zeros((1, H), jnp.float32)], axis=0)                # (8, H)
    bv = params["bv"].reshape((1,)).astype(jnp.float32)                        # (1,) SMEM

    values = pl.pallas_call(
        critic_kernel,
        out_shape=jax.ShapeDtypeStruct((b_pad, 1), jnp.float32),
        grid=grid,
        in_specs=[
            pl.BlockSpec((tile, D), lambda i: (i, 0)),       # obs: tiled over batch
            pl.BlockSpec((2, D), lambda i: (0, 0)),          # obs-width params (resident)
            pl.BlockSpec((D, H), lambda i: (0, 0)),          # w1 (resident)
            pl.BlockSpec((H, H), lambda i: (0, 0)),          # w2 (resident)
            pl.BlockSpec((8, H), lambda i: (0, 0)),          # hidden-width params (resident)
            pl.BlockSpec(memory_space=pltpu.MemorySpace.SMEM),  # v_out bias scalar
        ],
        out_specs=pl.BlockSpec((tile, 1), lambda i: (i, 0)),
        compiler_params=pltpu.CompilerParams(
            dimension_semantics=("parallel",),
            vmem_limit_bytes=32 * 1024 * 1024,
        ),
    )(obs, p_obs, params["w1"], params["w2"], p_hid, bv)

    if b_pad != B:
        values = values[:B]
    return values, rnn_states


def _reference_forward(cent_obs, params):
    """Pure-JAX reference (matches torch semantics) for a correctness check."""
    x = cent_obs.astype(jnp.float32)

    def ln(x, g, b):
        mu = jnp.mean(x, axis=-1, keepdims=True)
        var = jnp.mean((x - mu) ** 2, axis=-1, keepdims=True)
        return (x - mu) / jnp.sqrt(var + LN_EPS) * g + b

    x = ln(x, params["fn_g"], params["fn_b"])
    h = jnp.maximum(x @ params["w1"] + params["b1"], 0.0)
    h = ln(h, params["g1"], params["e1"])
    h = jnp.maximum(h @ params["w2"] + params["b2"], 0.0)
    h = ln(h, params["g2"], params["e2"])
    return jnp.sum(h * params["wv"], axis=-1, keepdims=True) + params["bv"]


def init_params(key, obs_dim, hidden):
    """Deterministic synthetic init (shapes per module __init__)."""
    ks = jax.random.split(key, 3)

    def lin(k, fan_in, fan_out, scale=None):
        scale = scale if scale is not None else 1.0 / jnp.sqrt(fan_in)
        w = jax.random.normal(k, (fan_in, fan_out), jnp.float32) * scale
        b = jnp.zeros((1, fan_out), jnp.float32)
        return w, b

    w1, b1 = lin(ks[0], obs_dim, hidden)
    w2, b2 = lin(ks[1], hidden, hidden)
    # v_out in the module uses gain=0 (zero weight); use small nonzero values
    # so the kernel output is non-trivial while staying deterministic.
    wv = jax.random.normal(ks[2], (1, hidden), jnp.float32) * 0.01   # stored as a row
    bv = jnp.zeros((1,), jnp.float32)

    return dict(
        fn_g=jnp.ones((1, obs_dim), jnp.float32),
        fn_b=jnp.zeros((1, obs_dim), jnp.float32),
        w1=w1, b1=b1,
        g1=jnp.ones((1, hidden), jnp.float32),
        e1=jnp.zeros((1, hidden), jnp.float32),
        w2=w2, b2=b2,
        g2=jnp.ones((1, hidden), jnp.float32),
        e2=jnp.zeros((1, hidden), jnp.float32),
        wv=wv, bv=bv,
    )


if __name__ == "__main__":
    # Small demo shapes; B=10 (not a multiple of the tile) + tile_b=8 exercises
    # both the batch grid (2 steps) and the padding path.
    B, OBS_DIM, HIDDEN, RECURRENT_N = 10, 12, 32, 1

    key = jax.random.PRNGKey(0)
    k_obs, k_rnn, k_par = jax.random.split(key, 3)

    cent_obs = jax.random.normal(k_obs, (B, OBS_DIM), jnp.float32)
    rnn_states = jax.random.normal(k_rnn, (B, RECURRENT_N, HIDDEN), jnp.float32)
    masks = jnp.ones((B, 1), jnp.float32)

    params = init_params(k_par, OBS_DIM, HIDDEN)

    values, new_rnn_states = multi_agent_critic_forward(
        cent_obs, rnn_states, masks, params, tile_b=8)
    values = jax.block_until_ready(values)
    new_rnn_states = jax.block_until_ready(new_rnn_states)

    assert values.shape == (B, 1) and values.dtype == jnp.float32
    assert new_rnn_states.shape == rnn_states.shape

    ref = _reference_forward(cent_obs, params)
    assert jnp.allclose(values, ref, atol=1e-4, rtol=1e-4), "mismatch vs JAX reference"

    print("KERNEL_OK")
</pallas_src>

<mosaic_0001>
module attributes {stable_mosaic.version = 11 : i64} {
  func.func @critic_kernel(%arg0: i32, %arg1: memref<8x12xf32, #tpu.memory_space<vmem>>, %arg2: memref<2x12xf32, #tpu.memory_space<vmem>>, %arg3: memref<12x32xf32, #tpu.memory_space<vmem>>, %arg4: memref<32x32xf32, #tpu.memory_space<vmem>>, %arg5: memref<8x32xf32, #tpu.memory_space<vmem>>, %arg6: memref<1xf32, #tpu.memory_space<smem>>, %arg7: memref<8x1xf32, #tpu.memory_space<vmem>>) attributes {dimension_semantics = [#tpu.dimension_semantics<parallel>], iteration_bounds = array<i64: 2>, scalar_prefetch = 0 : i64, scratch_operands = 0 : i64, tpu.core_type = #tpu.core_type<tc>, window_params = [{transform_indices = @transform_0, window_bounds = array<i64: 8, 12>}, {pipeline_mode = #tpu.pipeline_mode<synchronous>, transform_indices = @transform_1, window_bounds = array<i64: 2, 12>}, {pipeline_mode = #tpu.pipeline_mode<synchronous>, transform_indices = @transform_2, window_bounds = array<i64: 12, 32>}, {pipeline_mode = #tpu.pipeline_mode<synchronous>, transform_indices = @transform_3, window_bounds = array<i64: 32, 32>}, {pipeline_mode = #tpu.pipeline_mode<synchronous>, transform_indices = @transform_4, window_bounds = array<i64: 8, 32>}, {transform_indices = @transform_5, window_bounds = array<i64: 1>}, {transform_indices = @transform_6, window_bounds = array<i64: 8, 1>}]} {
    %c0 = arith.constant 0 : index
    %c0_0 = arith.constant 0 : index
    %0 = vector.load %arg1[%c0, %c0_0] : memref<8x12xf32, #tpu.memory_space<vmem>>, vector<8x12xf32>
    %c0_1 = arith.constant 0 : index
    %c0_2 = arith.constant 0 : index
    %1 = vector.load %arg2[%c0_1, %c0_2] : memref<2x12xf32, #tpu.memory_space<vmem>>, vector<1x12xf32>
    %c1 = arith.constant 1 : index
    %c0_3 = arith.constant 0 : index
    %2 = vector.load %arg2[%c1, %c0_3] : memref<2x12xf32, #tpu.memory_space<vmem>>, vector<1x12xf32>
    %cst = arith.constant dense<0.000000e+00> : vector<8xf32>
    %3 = vector.multi_reduction <add>, %0, %cst [1] : vector<8x12xf32> to vector<8xf32>
    %4 = vector.shape_cast %3 : vector<8xf32> to vector<8x1xf32>
    %5 = arith.mulf %0, %0 : vector<8x12xf32>
    %cst_4 = arith.constant dense<0.000000e+00> : vector<8xf32>
    %6 = vector.multi_reduction <add>, %5, %cst_4 [1] : vector<8x12xf32> to vector<8xf32>
    %7 = vector.shape_cast %6 : vector<8xf32> to vector<8x1xf32>
    %cst_5 = arith.constant 0.0833333358 : f32
    %8 = vector.broadcast %cst_5 : f32 to vector<8x1xf32>
    %9 = arith.mulf %4, %8 : vector<8x1xf32>
    %cst_6 = arith.constant 0.0833333358 : f32
    %10 = vector.broadcast %cst_6 : f32 to vector<8x1xf32>
    %11 = arith.mulf %7, %10 : vector<8x1xf32>
    %12 = arith.mulf %9, %9 : vector<8x1xf32>
    %13 = arith.subf %11, %12 : vector<8x1xf32>
    %cst_7 = arith.constant 0.000000e+00 : f32
    %14 = vector.broadcast %cst_7 : f32 to vector<8x1xf32>
    %15 = arith.maximumf %13, %14 : vector<8x1xf32>
    %16 = vector.broadcast %9 : vector<8x1xf32> to vector<8x12xf32>
    %17 = arith.subf %0, %16 : vector<8x12xf32>
    %cst_8 = arith.constant 9.99999974E-6 : f32
    %18 = vector.broadcast %cst_8 : f32 to vector<8x1xf32>
    %19 = arith.addf %15, %18 : vector<8x1xf32>
    %20 = math.rsqrt %19 : vector<8x1xf32>
    %21 = vector.broadcast %20 : vector<8x1xf32> to vector<8x12xf32>
    %22 = arith.mulf %17, %21 : vector<8x12xf32>
    %23 = vector.broadcast %1 : vector<1x12xf32> to vector<8x12xf32>
    %24 = arith.mulf %22, %23 : vector<8x12xf32>
    %25 = vector.broadcast %2 : vector<1x12xf32> to vector<8x12xf32>
    %26 = arith.addf %24, %25 : vector<8x12xf32>
    %c0_9 = arith.constant 0 : index
    %c0_10 = arith.constant 0 : index
    %27 = vector.load %arg5[%c0_9, %c0_10] : memref<8x32xf32, #tpu.memory_space<vmem>>, vector<1x32xf32>
    %c1_11 = arith.constant 1 : index
    %c0_12 = arith.constant 0 : index
    %28 = vector.load %arg5[%c1_11, %c0_12] : memref<8x32xf32, #tpu.memory_space<vmem>>, vector<1x32xf32>
    %c2 = arith.constant 2 : index
    %c0_13 = arith.constant 0 : index
    %29 = vector.load %arg5[%c2, %c0_13] : memref<8x32xf32, #tpu.memory_space<vmem>>, vector<1x32xf32>
    %c3 = arith.constant 3 : index
    %c0_14 = arith.constant 0 : index
    %30 = vector.load %arg5[%c3, %c0_14] : memref<8x32xf32, #tpu.memory_space<vmem>>, vector<1x32xf32>
    %c4 = arith.constant 4 : index
    %c0_15 = arith.constant 0 : index
    %31 = vector.load %arg5[%c4, %c0_15] : memref<8x32xf32, #tpu.memory_space<vmem>>, vector<1x32xf32>
    %c5 = arith.constant 5 : index
    %c0_16 = arith.constant 0 : index
    %32 = vector.load %arg5[%c5, %c0_16] : memref<8x32xf32, #tpu.memory_space<vmem>>, vector<1x32xf32>
    %c6 = arith.constant 6 : index
    %c0_17 = arith.constant 0 : index
    %33 = vector.load %arg5[%c6, %c0_17] : memref<8x32xf32, #tpu.memory_space<vmem>>, vector<1x32xf32>
    %c0_18 = arith.constant 0 : index
    %c0_19 = arith.constant 0 : index
    %34 = vector.load %arg3[%c0_18, %c0_19] : memref<12x32xf32, #tpu.memory_space<vmem>>, vector<12x32xf32>
    %cst_20 = arith.constant dense<0.000000e+00> : vector<8x32xf32>
    %35 = tpu.matmul %26, %34, %cst_20 {dimension_numbers = #tpu.dot_dimension_numbers<[1], [0], [0], [1], [0, 0, 1, 1], [], []>} : vector<8x12xf32>, vector<12x32xf32>, vector<8x32xf32> -> vector<8x32xf32>
    %36 = vector.broadcast %27 : vector<1x32xf32> to vector<8x32xf32>
    %37 = arith.addf %35, %36 : vector<8x32xf32>
    %cst_21 = arith.constant 0.000000e+00 : f32
    %38 = vector.broadcast %cst_21 : f32 to vector<8x32xf32>
    %39 = arith.maximumf %37, %38 : vector<8x32xf32>
    %cst_22 = arith.constant dense<0.000000e+00> : vector<8xf32>
    %40 = vector.multi_reduction <add>, %39, %cst_22 [1] : vector<8x32xf32> to vector<8xf32>
    %41 = vector.shape_cast %40 : vector<8xf32> to vector<8x1xf32>
    %42 = arith.mulf %39, %39 : vector<8x32xf32>
    %cst_23 = arith.constant dense<0.000000e+00> : vector<8xf32>
    %43 = vector.multi_reduction <add>, %42, %cst_23 [1] : vector<8x32xf32> to vector<8xf32>
    %44 = vector.shape_cast %43 : vector<8xf32> to vector<8x1xf32>
    %cst_24 = arith.constant 3.125000e-02 : f32
    %45 = vector.broadcast %cst_24 : f32 to vector<8x1xf32>
    %46 = arith.mulf %41, %45 : vector<8x1xf32>
    %cst_25 = arith.constant 3.125000e-02 : f32
    %47 = vector.broadcast %cst_25 : f32 to vector<8x1xf32>
    %48 = arith.mulf %44, %47 : vector<8x1xf32>
    %49 = arith.mulf %46, %46 : vector<8x1xf32>
    %50 = arith.subf %48, %49 : vector<8x1xf32>
    %cst_26 = arith.constant 0.000000e+00 : f32
    %51 = vector.broadcast %cst_26 : f32 to vector<8x1xf32>
    %52 = arith.maximumf %50, %51 : vector<8x1xf32>
    %53 = vector.broadcast %46 : vector<8x1xf32> to vector<8x32xf32>
    %54 = arith.subf %39, %53 : vector<8x32xf32>
    %cst_27 = arith.constant 9.99999974E-6 : f32
    %55 = vector.broadcast %cst_27 : f32 to vector<8x1xf32>
    %56 = arith.addf %52, %55 : vector<8x1xf32>
    %57 = math.rsqrt %56 : vector<8x1xf32>
    %58 = vector.broadcast %57 : vector<8x1xf32> to vector<8x32xf32>
    %59 = arith.mulf %54, %58 : vector<8x32xf32>
    %60 = vector.broadcast %28 : vector<1x32xf32> to vector<8x32xf32>
    %61 = arith.mulf %59, %60 : vector<8x32xf32>
    %62 = vector.broadcast %29 : vector<1x32xf32> to vector<8x32xf32>
    %63 = arith.addf %61, %62 : vector<8x32xf32>
    %c0_28 = arith.constant 0 : index
    %c0_29 = arith.constant 0 : index
    %64 = vector.load %arg4[%c0_28, %c0_29] : memref<32x32xf32, #tpu.memory_space<vmem>>, vector<32x32xf32>
    %cst_30 = arith.constant dense<0.000000e+00> : vector<8x32xf32>
    %65 = tpu.matmul %63, %64, %cst_30 {dimension_numbers = #tpu.dot_dimension_numbers<[1], [0], [0], [1], [0, 0, 1, 1], [], []>} : vector<8x32xf32>, vector<32x32xf32>, vector<8x32xf32> -> vector<8x32xf32>
    %66 = vector.broadcast %30 : vector<1x32xf32> to vector<8x32xf32>
    %67 = arith.addf %65, %66 : vector<8x32xf32>
    %cst_31 = arith.constant 0.000000e+00 : f32
    %68 = vector.broadcast %cst_31 : f32 to vector<8x32xf32>
    %69 = arith.maximumf %67, %68 : vector<8x32xf32>
    %cst_32 = arith.constant dense<0.000000e+00> : vector<8xf32>
    %70 = vector.multi_reduction <add>, %69, %cst_32 [1] : vector<8x32xf32> to vector<8xf32>
    %71 = vector.shape_cast %70 : vector<8xf32> to vector<8x1xf32>
    %72 = arith.mulf %69, %69 : vector<8x32xf32>
    %cst_33 = arith.constant dense<0.000000e+00> : vector<8xf32>
    %73 = vector.multi_reduction <add>, %72, %cst_33 [1] : vector<8x32xf32> to vector<8xf32>
    %74 = vector.shape_cast %73 : vector<8xf32> to vector<8x1xf32>
    %cst_34 = arith.constant 3.125000e-02 : f32
    %75 = vector.broadcast %cst_34 : f32 to vector<8x1xf32>
    %76 = arith.mulf %71, %75 : vector<8x1xf32>
    %cst_35 = arith.constant 3.125000e-02 : f32
    %77 = vector.broadcast %cst_35 : f32 to vector<8x1xf32>
    %78 = arith.mulf %74, %77 : vector<8x1xf32>
    %79 = arith.mulf %76, %76 : vector<8x1xf32>
    %80 = arith.subf %78, %79 : vector<8x1xf32>
    %cst_36 = arith.constant 0.000000e+00 : f32
    %81 = vector.broadcast %cst_36 : f32 to vector<8x1xf32>
    %82 = arith.maximumf %80, %81 : vector<8x1xf32>
    %83 = vector.broadcast %76 : vector<8x1xf32> to vector<8x32xf32>
    %84 = arith.subf %69, %83 : vector<8x32xf32>
    %cst_37 = arith.constant 9.99999974E-6 : f32
    %85 = vector.broadcast %cst_37 : f32 to vector<8x1xf32>
    %86 = arith.addf %82, %85 : vector<8x1xf32>
    %87 = math.rsqrt %86 : vector<8x1xf32>
    %88 = vector.broadcast %87 : vector<8x1xf32> to vector<8x32xf32>
    %89 = arith.mulf %84, %88 : vector<8x32xf32>
    %90 = vector.broadcast %31 : vector<1x32xf32> to vector<8x32xf32>
    %91 = arith.mulf %89, %90 : vector<8x32xf32>
    %92 = vector.broadcast %32 : vector<1x32xf32> to vector<8x32xf32>
    %93 = arith.addf %91, %92 : vector<8x32xf32>
    %94 = vector.broadcast %33 : vector<1x32xf32> to vector<8x32xf32>
    %95 = arith.mulf %93, %94 : vector<8x32xf32>
    %cst_38 = arith.constant dense<0.000000e+00> : vector<8xf32>
    %96 = vector.multi_reduction <add>, %95, %cst_38 [1] : vector<8x32xf32> to vector<8xf32>
    %97 = vector.shape_cast %96 : vector<8xf32> to vector<8x1xf32>
    %c0_39 = arith.constant 0 : index
    %98 = memref.load %arg6[%c0_39] : memref<1xf32, #tpu.memory_space<smem>>
    %99 = vector.broadcast %98 : f32 to vector<8x1xf32>
    %100 = arith.addf %97, %99 : vector<8x1xf32>
    %c0_40 = arith.constant 0 : index
    %c0_41 = arith.constant 0 : index
    %101 = vector.load %arg7[%c0_40, %c0_41] : memref<8x1xf32, #tpu.memory_space<vmem>>, vector<8x1xf32>
    tpu.vector_store %arg7[%c0_40, %c0_41], %100 {strides = array<i32>} : memref<8x1xf32, #tpu.memory_space<vmem>>, vector<8x1xf32>,
    return
  }
  func.func @transform_0(%arg0: i32) -> (i32, i32) {
    %c0_i32 = arith.constant 0 : i32
    %c0_i32_0 = arith.constant 0 : i32
    return %arg0, %c0_i32 : i32, i32
  }
  func.func @transform_1(%arg0: i32) -> (i32, i32) {
    %c0_i32 = arith.constant 0 : i32
    %c0_i32_0 = arith.constant 0 : i32
    %c0_i32_1 = arith.constant 0 : i32
    return %c0_i32, %c0_i32_0 : i32, i32
  }
  func.func @transform_2(%arg0: i32) -> (i32, i32) {
    %c0_i32 = arith.constant 0 : i32
    %c0_i32_0 = arith.constant 0 : i32
    %c0_i32_1 = arith.constant 0 : i32
    return %c0_i32, %c0_i32_0 : i32, i32
  }
  func.func @transform_3(%arg0: i32) -> (i32, i32) {
    %c0_i32 = arith.constant 0 : i32
    %c0_i32_0 = arith.constant 0 : i32
    %c0_i32_1 = arith.constant 0 : i32
    return %c0_i32, %c0_i32_0 : i32, i32
  }
  func.func @transform_4(%arg0: i32) -> (i32, i32) {
    %c0_i32 = arith.constant 0 : i32
    %c0_i32_0 = arith.constant 0 : i32
    %c0_i32_1 = arith.constant 0 : i32
    return %c0_i32, %c0_i32_0 : i32, i32
  }
  func.func @transform_5(%arg0: i32) -> i32 {
    %c0_i32 = arith.constant 0 : i32
    %c0_i32_0 = arith.constant 0 : i32
    return %c0_i32 : i32
  }
  func.func @transform_6(%arg0: i32) -> (i32, i32) {
    %c0_i32 = arith.constant 0 : i32
    %c0_i32_0 = arith.constant 0 : i32
    return %arg0, %c0_i32 : i32, i32
  }
}

</mosaic_0001>

<bundles_post_ra>
// kernel: tpu_custom_call.1
= control target key start
LH: loop header
LB: loop body
LE: loop exit
PB: predicated region body
PF: predicated region fallthrough
CT: control target
= control target key end

     0   :  { %s1165_s0 = inlined_call_operand.hbm [shape: f32[16,12], index: 0, kind: input, shape index: {}]   ;;  %s1166_s1 = inlined_call_operand.vmem [shape: f32[2,12], index: 1, kind: input, shape index: {}]   ;;  %s1167_s2 = inlined_call_operand.hbm [shape: f32[12,32], index: 2, kind: input, shape index: {}]   ;;  %s1168_s3 = inlined_call_operand.hbm [shape: f32[32,32], index: 3, kind: input, shape index: {}]   ;;  %s1169_s4 = inlined_call_operand.vmem [shape: f32[8,32], index: 4, kind: input, shape index: {}]   ;;  %s1170_s5 = inlined_call_operand.<no memory space> [shape: f32[1], index: 5, kind: input, shape index: {}]   ;;  %s1171_s6 = inlined_call_operand.vmem [shape: f32[16,1], index: 6, kind: output, shape index: {}]  }
   0x1   :  { %11 = sst [smem:[#allocation2]] %s1170_s5 }
   0x2   :  { %12 = vsyncpa [#allocation4], 0 }
   0x3   :  { %14 = vsyncpa [#allocation4 + $0x1], 0 }
   0x4   :  { %15 = vsyncpa [#allocation6], 0  ;;  %s957_s23 = smov 0   ;;  %s959_s24 = smov 0  }
   0x5   :  { %s961_s25 = smov 0   ;;  %s963_s26 = smov 0  }
   0x6 LB: > { %s976_s5 = sadd.s32 4294967295, %s908_s26   ;;  %p41_p0 = scmp.ne.s32.totalorder %s900_s24, %s896_s23  ;;  %s908_s26 = sphi %s963_s26, %s1186_s26   ;;  %s904_s25 = sphi %s961_s25, %s1185_s25   ;;  %s900_s24 = sphi %s959_s24, %s1184_s24   ;;  %s896_s23 = sphi %s957_s23, %s1183_s23  }
   0x7   : > { %p1172_p1 = scmp.eq.s32.totalorder %s976_s5, 0  ;;  %p651_p2 = scmp.ge.s32.totalorder %s908_s26, 1 }
   0x8   : > { %p183_p3 = scmp.lt.s32.totalorder %s908_s26, 3  ;;  %s910_s29 = smov [#allocation5]  }
   0x9   : > { %p984_p4 = por %p1172_p1, %p41_p0  ;;  %s198_s30 = sshll.u32 %s910_s29, 4  ;;  %s199_s30 = int_to_ptr.vmem [resolvable:$true] %s198_s30 }
   0xa   : > { %p988_p5 = pnand %p651_p2, %p183_p3  ;;  %s911_s8 = smov [#allocation7]  }
   0xb   : > { %s1175_s27 = scalar_select %p984_p4, 1, 0 }
   0xc   : > { %s1176_s28 = scalar_select %p988_p5, 1, 0 }
   0xd   : > { %p722_p6 = pneg %p988_p5  ;;  %s211_s9 = sshll.u32 %s911_s8, 4  ;;  %s1000_s9 = int_to_ptr.vmem [resolvable:$true] %s211_s9 }
   0xe   : > { %s784_s12 = scalar_lea.hbm %s1167_s2, 256 }
   0xf   : > { %p996_p7 = pnand %p722_p6, %p1172_p1  ;;  %p785_p8 = scmp.ne.s32.totalorder %s1167_s2, %s784_s12 }
  0x10   : > { %p791_p12 = scmp.lt.u32.totalorder %s784_s12, %s1167_s2 }
  0x11   : > { %p786_p9 = pneg %p996_p7 }
  0x13   : > { %p787_p10 = pnand %p786_p9, %p785_p8 }
  0x15   : > { %p788_p11 = pneg %p787_p10 }
  0x17   : > { %p793_p13 = pnand %p791_p12, %p788_p11 }
  0x19   : > { %796 = shalt.err (!%p793_p13)
}
  0x1a   : > { %s797_s17 = scalar_lea.vmem %s199_s30, 256  ;;  %p805_p6 = scmp.lt.s32.totalorder %s199_s30, %s199_s30 }
  0x1b   : > { %p798_p0 = scmp.ne.s32.totalorder %s199_s30, %s797_s17  ;;  %p806_p1 = scmp.lt.s32.totalorder %s797_s17, %s797_s17 }
  0x1d   : > { %p800_p2 = pnand %p798_p0, %p786_p9  ;;  %p807_p4 = por %p806_p1, %p805_p6 }
  0x1f   : > { %p801_p3 = pneg %p800_p2 }
  0x21   : > { %p808_p5 = pnand %p807_p4, %p801_p3 }
  0x23   : > { %811 = shalt.err (!%p808_p5)
}
  0x24   : > { %s912_s18 = smov 128   ;;  %s913_s19 = smov 8  }
  0x25   : > { %725 = dma.hbm_to_vmem [thread:$0]  (!%p996_p7), %s1167_s2, 256, %s199_s30, [#allocation6], %s912_s18, %s912_s18, %s913_s19  }
  0x26   : > { %s812_s29 = scalar_lea.hbm %s1168_s3, 512 }
  0x27   : > { %p813_p8 = scmp.ne.s32.totalorder %s1168_s3, %s812_s29  ;;  %p819_p5 = scmp.lt.u32.totalorder %s812_s29, %s1168_s3 }
  0x29   : > { %p815_p1 = pnand %p813_p8, %p786_p9 }
  0x2b   : > { %p816_p4 = pneg %p815_p1 }
  0x2d   : > { %p821_p10 = pnand %p819_p5, %p816_p4 }
  0x2f   : > { %824 = shalt.err (!%p821_p10)
}
  0x30   : > { %s825_s30 = scalar_lea.vmem %s1000_s9, 512  ;;  %p833_p0 = scmp.lt.s32.totalorder %s1000_s9, %s1000_s9 }
  0x31   : > { %p826_p11 = scmp.ne.s32.totalorder %s1000_s9, %s825_s30  ;;  %p834_p2 = scmp.lt.s32.totalorder %s825_s30, %s825_s30 }
  0x33   : > { %p828_p12 = pnand %p826_p11, %p786_p9  ;;  %p835_p3 = por %p834_p2, %p833_p0 }
  0x35   : > { %p829_p13 = pneg %p828_p12 }
  0x37   : > { %p836_p6 = pnand %p835_p3, %p829_p13 }
  0x39   : > { %839 = shalt.err (!%p836_p6)
}
  0x3a   : > { %728 = dma.hbm_to_vmem [thread:$0]  (!%p996_p7), %s1168_s3, 512, %s1000_s9, [#allocation6], %s912_s18, %s912_s18, %s913_s19  }
  0x3b   : > { %s1050_s15 = sadd.s32 1, %s908_s26   ;;  %s28_s16 = sadd.s32 1, %s904_s25 }
  0x3c   : > { %s25_s7 = ssub.s32 %s908_s26, %s1050_s15  ;;  %p35_p9 = scmp.ne.s32.totalorder %s904_s25, %s900_s24 }
  0x3d   : > { %p26_p8 = scmp.eq.s32.totalorder %s25_s7, 0  ;;  %p36_p1 = scmp.eq.s32.totalorder %s908_s26, 0 }
  0x3e   : > { %p735_p4 = scmp.lt.s32.totalorder %s908_s26, 2  ;;  %s231_s17 = sand.u32 1, %s904_s25  }
  0x3f   : > { %s1061_s20 = scalar_select %p26_p8, %s904_s25, %s28_s16  }
  0x40   : > { %p37_p5 = por %p36_p1, %p35_p9  ;;  %s655_s21 = sshll.u32 %s231_s17, 3 }
  0x41   : > { %s656_s22 = sshll.u32 %s908_s26, 7  ;;  %s235_s9 = scalar_lea.vmem [#allocation3], %s655_s21 }
  0x42   : > { %s1067_s8 = scalar_lea.hbm %s1165_s0, %s656_s22  ;;  %s242_s18 = sshll.u32 %s235_s9, 4  ;;  %s1073_s18 = int_to_ptr.vmem [resolvable:$true] %s242_s18 }
  0x43   : > { %p1069_p7 = pnand %p735_p4, %p37_p5  ;;  %s232_s26 = scalar_lea.sflag [#allocation4], %s231_s17 }
  0x44   : > { %s840_s10 = scalar_lea.hbm %s1067_s8, 128  ;;  %s845_s30 = scalar_lea.hbm %s1165_s0, 256 }
  0x45   : > { %p841_p10 = scmp.ne.s32.totalorder %s1067_s8, %s840_s10  ;;  %p842_p11 = pneg %p1069_p7 }
  0x46   : > { %p846_p0 = scmp.lt.u32.totalorder %s1067_s8, %s1165_s0  ;;  %p847_p2 = scmp.lt.u32.totalorder %s845_s30, %s840_s10 }
  0x47   : > { %p843_p12 = pnand %p842_p11, %p841_p10  ;;  %p849_p6 = scmp.lt.u32.totalorder %s840_s10, %s1067_s8 }
  0x48   : > { %p848_p3 = por %p847_p2, %p846_p0 }
  0x49   : > { %p844_p13 = pneg %p843_p12 }
  0x4a   : > { %p850_p9 = por %p849_p6, %p848_p3 }
  0x4c   : > { %p851_p8 = pnand %p850_p9, %p844_p13 }
  0x4e   : > { %854 = shalt.err (!%p851_p8)
}
  0x4f   : > { %s855_s16 = scalar_lea.vmem %s1073_s18, 128  ;;  %s914_s7 = smov [#allocation3]  }
  0x50   : > { %p856_p1 = scmp.ne.s32.totalorder %s1073_s18, %s855_s16  ;;  %s860_s17 = sshll.u32 %s914_s7, 4  ;;  %s861_s17 = int_to_ptr.vmem [resolvable:$false] %s860_s17 }
  0x51   : > { %s862_s21 = scalar_lea.vmem %s861_s17, 256  ;;  %p863_p10 = scmp.lt.s32.totalorder %s1073_s18, %s861_s17 }
  0x52   : > { %p858_p4 = pnand %p856_p1, %p842_p11  ;;  %p864_p12 = scmp.lt.s32.totalorder %s862_s21, %s855_s16 }
  0x54   : > { %p859_p5 = pneg %p858_p4  ;;  %p865_p0 = por %p864_p12, %p863_p10 }
  0x56   : > { %p866_p2 = pnand %p865_p0, %p859_p5 }
  0x58   : > { %869 = shalt.err (!%p866_p2)
}
  0x59   : > { %732 = dma.hbm_to_vmem [thread:$0]  (!%p1069_p7), %s1067_s8, 128, %s1073_s18, %s232_s26  }
  0x5a   : > { %p1179_p13 = scmp.ne.s32.totalorder %s1176_s28, 0 }
  0x5b   : > { %s253_s22 = sand.u32 (!%p1179_p13), 1, %s900_s24   ;;  %p1180_p11 = scmp.ne.s32.totalorder (!%p1179_p13), %s1175_s27, 0 }
  0x5c   : > { %251 = sbr.rel (%p1179_p13) target bundleno = 1198 (0x4ae), region = 44  ;;  %s658_s23 = sshll.u32 (!%p1179_p13), %s253_s22, 3 }
  0x5d   : > { %s254_s29 = scalar_lea.sflag (!%p1179_p13), [#allocation4], %s253_s22  ;;  %s257_s9 = scalar_lea.vmem (!%p1179_p13), [#allocation3], %s658_s23 }
  0x63   : > { %887 = dma.done.wait (%p1180_p11), %s254_s29, 128  }
  0x64   : > { %889 = vsyncadd (%p1180_p11), %s254_s29, 4294967168  ;;  %p1181_p3 = scmp.eq.s32.totalorder %s976_s5, 0 }
  0x66   : > { %891 = dma.done.wait (%p1181_p3), [#allocation6], 768   ;;  %p1182_p6 = pmov %p1181_p3 }
  0x67   : > { %vm300_vm0 = vcmask 97280   ;;  %v297_v0 = vld [vmem:[%s257_s9] sm:$0xff]  ;;  %v334_v4 = vld [vmem:[#allocation5] sm:$0xff]  ;;  %v335_v5 = vld [vmem:[#allocation5 + $0x8] sm:$0xf]  ;;  %vm343_vm1 = vcmask 1043456  }
  0x68   : > { %893 = vsyncadd (%p1182_p6), [#allocation6], 4294966528  ;;  %v301_v1 = vsel %vm300_vm0, %v297_v0, 0.0  ;;  %v304_v2 = vmul.f32 %v297_v0, %v297_v0  ;;  %v915_v6 = vmov 0.0|0.0   ;;  %v703_v7 = vpack.c.bf16 %v335_v5, %v334_v4  ;;  %v662_v19 = vld [vmem:[%s1166_s1] ss:$0 sm:$0xff] }
  0x69   : > { %302 = vadd.xlane.f32.xlu0 %v301_v1  ;;  %702 = vmatprep.subr.bf16.mxu0 %v915_v6  ;;  %vm916_vm2 = vmmov 1   ;;  %vm917_vm4 = vmmov 0   ;;  %v918_v8 = vmov 0.0   ;;  %v663_v21 = vld [vmem:[%s1166_s1 + $0x1] ss:$0 sm:$0xff]  ;;  %vm418_vm5 = vcmask 261120  }
  0x6a   : > { %v305_v3 = vsel %vm300_vm0, %v304_v2, 0.0  ;;  %vm704_vm3 = vmpackc.low %vm343_vm1, %vm916_vm2  ;;  %706 = vmatprep.subr.bf16.mxu1 %v915_v6  ;;  %688 = vmatprep.mubr.msk.f32.mxu0 %vm917_vm4, %v918_v8  ;;  %v664_v24 = vld [vmem:[%s1169_s4] ss:$0 sm:$0xff]  ;;  %v446_v33 = vld [vmem:[#allocation7 + $0x8] sm:$0xff]  ;;  %p293_p7 = scmp.lt.s32.totalorder %s976_s5, 1  ;;  %s561_s29 = sld [smem:[#allocation2]] }
  0x6b   : > { %699 = vmatprep.mubr.msk.f32.mxu1 %vm917_vm4, %v918_v8  ;;  %705 = vmatpush3.bf16.msk.msra.mxu0 %vm704_vm3, %v703_v7  ;;  %v445_v32 = vld [vmem:[#allocation7] sm:$0xff]  ;;  %v447_v34 = vld [vmem:[#allocation7 + $0x10] sm:$0xff]  ;;  %v448_v36 = vld [vmem:[#allocation7 + $0x18] sm:$0xff]  ;;  %vm564_vm6 = vcmask 7168  }
  0x6c   : > { %v707_v35 = vpack.c.bf16 %v446_v33, %v445_v32  ;;  %v710_v37 = vpack.c.bf16 %v448_v36, %v447_v34  ;;  %v667_v48 = vld [vmem:[%s1169_s4 + $0x1] ss:$0 sm:$0xff]  ;;  %v668_v50 = vld [vmem:[%s1169_s4 + $0x2] ss:$0 sm:$0xff]  ;;  %v669_v53 = vld [vmem:[%s1169_s4 + $0x3] ss:$0 sm:$0xff] }
  0x6d   : > { %306 = vadd.xlane.f32.xlu0 %v305_v3  ;;  %v671_v7 = vld [vmem:[%s1169_s4 + $0x4] ss:$0 sm:$0xff]  ;;  %s1188_s5 = smov (!%p293_p7, %s976_s5), 1 }
  0x6e   : > { %708 = vmatpush3.bf16.msra.mxu1 %v707_v35  ;;  %s661_s9 = sshll.u32 %s1188_s5, 3 }
  0x6f   : > { %709 = vmatprep.subr.bf16.mxu1 %v915_v6  ;;  %s296_s8 = scalar_lea.vmem %s1171_s6, %s661_s9 }
  0x72   : > { %711 = vmatpush3.bf16.msra.mxu1 %v710_v37 }
  0xf6   : > { %v303_v9 = vpop.xlane.xlu0 %302 }
  0xf7   : > { %v308_v10 = vmul.f32 0.083333336, %v303_v9  ;;  %v672_v9 = vld [vmem:[%s1169_s4 + $0x5] ss:$0 sm:$0xff] }
  0xf9   : > { %v310_v12 = vmul.f32 %v308_v10, %v308_v10  ;;  %v313_v17 = vsub.f32 %v297_v0, %v308_v10 }
  0xfa   : > { %v307_v11 = vpop.xlane.xlu0 %306 }
  0xfb   : > { %v309_v13 = vmul.f32 0.083333336, %v307_v11  ;;  %v673_v11 = vld [vmem:[%s1169_s4 + $0x6] ss:$0 sm:$0xff] }
  0xfd   : > { %v311_v14 = vsub.f32 %v309_v13, %v310_v12 }
  0xff   : > { %v312_v15 = vmax.f32 %v311_v14, 0.0 }
 0x101   : > { %v314_v16 = vadd.f32 1e-05, %v312_v15  ;;  %v562_v15 = vstv %s561_s29 }
 0x103   : > { %778 = vrsqrt.f32 %v314_v16 }
 0x10d   : > { %v779_v18 = vpop.eup %778 }
 0x10e   : > { %v316_v20 = vmul.f32 %v779_v18, %v313_v17 }
 0x110   : > { %v321_v22 = vmul.f32 %v662_v19, %v316_v20 }
 0x112   : > { %v326_v23 = vadd.f32 %v663_v21, %v321_v22 }
 0x114   : > { %689 = vmatmul.mubr.msk.f32.vlgmr.msra.gmra.mrb[0].mxu0 %vm300_vm0, %v326_v23 }
 0x1e7   : > { %v413_v25 = vpop.f32.mrb[0].mxu0 }
 0x1e8   : > { %v414_v26 = vadd.f32 %v664_v24, %v413_v25  ;;  %v690_v27 = vpop.f32.mrb[1].mxu0 }
 0x1ea   : > { %v417_v28 = vmax.f32 %v414_v26, 0.0 }
 0x1ec   : > { %v419_v29 = vsel %vm418_vm5, %v417_v28, 0.0  ;;  %v422_v30 = vmul.f32 %v417_v28, %v417_v28 }
 0x1ed   : > { %420 = vadd.xlane.f32.xlu1 %v419_v29 }
 0x1ee   : > { %v423_v31 = vsel %vm418_vm5, %v422_v30, 0.0 }
 0x1f1   : > { %424 = vadd.xlane.f32.xlu1 %v423_v31 }
 0x27a   : > { %v421_v38 = vpop.xlane.xlu1 %420 }
 0x27b   : > { %v426_v39 = vmul.f32 0.03125, %v421_v38 }
 0x27d   : > { %v428_v41 = vmul.f32 %v426_v39, %v426_v39  ;;  %v431_v46 = vsub.f32 %v417_v28, %v426_v39 }
 0x27e   : > { %v425_v40 = vpop.xlane.xlu1 %424 }
 0x27f   : > { %v427_v42 = vmul.f32 0.03125, %v425_v40 }
 0x281   : > { %v429_v43 = vsub.f32 %v427_v42, %v428_v41 }
 0x283   : > { %v430_v44 = vmax.f32 %v429_v43, 0.0 }
 0x285   : > { %v432_v45 = vadd.f32 1e-05, %v430_v44 }
 0x287   : > { %780 = vrsqrt.f32 %v432_v45 }
 0x291   : > { %v781_v47 = vpop.eup %780 }
 0x292   : > { %v434_v49 = vmul.f32 %v781_v47, %v431_v46 }
 0x294   : > { %v439_v51 = vmul.f32 %v667_v48, %v434_v49 }
 0x296   : > { %v444_v52 = vadd.f32 %v668_v50, %v439_v51 }
 0x298   : > { %700 = vmatmul.mubr.msk.f32.vlgmr.msra.gmra.mrb[0].mxu1 %vm418_vm5, %v444_v52 }
 0x36b   : > { %v522_v54 = vpop.f32.mrb[0].mxu1 }
 0x36c   : > { %v523_v55 = vadd.f32 %v669_v53, %v522_v54  ;;  %v701_v56 = vpop.f32.mrb[1].mxu1 }
 0x36e   : > { %v526_v57 = vmax.f32 %v523_v55, 0.0 }
 0x370   : > { %v527_v58 = vsel %vm418_vm5, %v526_v57, 0.0  ;;  %v530_v59 = vmul.f32 %v526_v57, %v526_v57 }
 0x371   : > { %528 = vadd.xlane.f32.xlu0 %v527_v58 }
 0x372   : > { %v531_v60 = vsel %vm418_vm5, %v530_v59, 0.0 }
 0x373   : > { %532 = vadd.xlane.f32.xlu1 %v531_v60 }
 0x3fe   : > { %v529_v61 = vpop.xlane.xlu0 %528 }
 0x3ff   : > { %v534_v62 = vmul.f32 0.03125, %v529_v61 }
 0x400   : > { %v533_v63 = vpop.xlane.xlu1 %532 }
 0x401   : > { %v536_v0 = vmul.f32 %v534_v62, %v534_v62  ;;  %v535_v1 = vmul.f32 0.03125, %v533_v63  ;;  %v539_v5 = vsub.f32 %v526_v57, %v534_v62 }
 0x403   : > { %v537_v2 = vsub.f32 %v535_v1, %v536_v0 }
 0x405   : > { %v538_v3 = vmax.f32 %v537_v2, 0.0 }
 0x407   : > { %v540_v4 = vadd.f32 1e-05, %v538_v3 }
 0x409   : > { %782 = vrsqrt.f32 %v540_v4 }
 0x413   : > { %v783_v6 = vpop.eup %782 }
 0x414   : > { %v542_v8 = vmul.f32 %v783_v6, %v539_v5 }
 0x416   : > { %v547_v10 = vmul.f32 %v671_v7, %v542_v8 }
 0x418   : > { %v552_v12 = vadd.f32 %v672_v9, %v547_v10 }
 0x41a   : > { %v557_v13 = vmul.f32 %v673_v11, %v552_v12 }
 0x41c   : > { %v558_v14 = vsel %vm418_vm5, %v557_v13, 0.0 }
 0x41d   : > { %559 = vadd.xlane.f32.xlu0 %v558_v14 }
 0x4aa   : > { %v560_v16 = vpop.xlane.xlu0 %559 }
 0x4ab   : > { %v563_v17 = vadd.f32 %v562_v15, %v560_v16 }
 0x4ad   : > { %565 = vst.msk [vmem:[%s296_s8] sm:$0xff] %vm564_vm6, %v563_v17 }
 0x4ae PF: > { %p18_p9 = scmp.ge.s32.totalorder %s1050_s15, 4   ;;  %s1183_s23 = smov %s900_s24 }
 0x4af   : > { %s1184_s24 = smov %s904_s25  ;;  %s1185_s25 = smov %s1061_s20 }
 0x4b0   : > { %s1186_s26 = smov %s1050_s15  ;;  %20 = sbr.rel (!%p18_p9) target bundleno = 6 (0x6), region = 92 }
 0x4b7   :  { %585 = vsyncpa [#allocation4], 1 }
 0x4b8   :  { %587 = vsyncpa [#allocation4 + $0x1], 1 }
 0x4b9   :  { %588 = vsyncpa [#allocation6], 1 }

</bundles_post_ra>
